<compile_context>
chip_gen: v7x
topology: tpu7x:2x2x1
jax: 0.10.0
libtpu: 0.0.40
codegen_flags: <defaults>
</compile_context>

<pallas_src>
import math

import jax
import jax.numpy as jnp
from jax.experimental import pallas as pl
from jax.experimental.pallas import tpu as pltpu


def make_pe_table(d_model: int, max_len: int = 5000) -> jnp.ndarray:
    """PyTorch-identical buffer: sinusoidal table of shape (max_len, 1, d_model), f32."""
    pos = jnp.arange(max_len, dtype=jnp.float32)[:, None]                  # (max_len, 1)
    div = jnp.exp(jnp.arange(0, d_model, 2, dtype=jnp.float32)
                  * -(math.log(10000.0) / d_model))                        # (ceil(d/2),)
    ang = pos * div                                                        # (max_len, ceil(d/2))
    pe = jnp.zeros((max_len, d_model), dtype=jnp.float32)
    pe = pe.at[:, 0::2].set(jnp.sin(ang))
    pe = pe.at[:, 1::2].set(jnp.cos(ang)[:, : d_model // 2])
    return pe[:, None, :]                                                  # (max_len, 1, d_model)


def _pe_add_kernel(x_ref, pe_ref, o_ref):
    # x_ref / o_ref: (seq_tile, b_tile, D)    pe_ref: (seq_tile, 1, D)
    # Single broadcast add along the sublane (batch) axis: one dense VPU add per
    # tile, no lane-offset slicing, no cross-lane relayout.
    o_ref[...] = x_ref[...] + pe_ref[...]


def _hw_params():
    """Best-effort chip detection; conservative defaults if detection fails."""
    target_block = 4 * 1024 * 1024      # ~4 MiB x-block (v5e/v6e sweet spot)
    vmem_limit = 32 * 1024 * 1024       # scoped-VMEM cap, safe on all gens
    num_cores = 1
    kind = ""
    try:
        kind = jax.devices()[0].device_kind.lower()
    except Exception:
        pass
    vmem_cap = 0
    try:
        vmem_cap = int(getattr(pltpu.get_tpu_info(), "vmem_capacity_bytes", 0) or 0)
    except Exception:
        pass
    # v7x: 2 TensorCores/chip, 64 MiB VMEM/TC, ~3.2 TB/s HBM -> bigger blocks
    # amortize the fixed per-grid-step cost, and the grid needs >=2 parallel
    # steps to feed both cores.
    if ("v7" in kind) or (0 < vmem_cap <= 64 * 1024 * 1024):
        target_block = 8 * 1024 * 1024
        vmem_limit = 48 * 1024 * 1024
        num_cores = 2
    return target_block, vmem_limit, num_cores


def _choose_tiles(S, B, D, itemsize, target_bytes, num_cores):
    row_bytes = B * D * itemsize            # one seq row of x
    b_tile = B
    if row_bytes > target_bytes:
        # Wide-B*D fallback (VMEM guard, hits v7x first): split the batch axis
        # into the largest multiple-of-8 divisor of B whose row fits the target.
        cand = min(B - 1, target_bytes // max(1, D * itemsize))
        cand = (cand // 8) * 8
        while cand >= 8 and B % cand != 0:
            cand -= 8
        if cand >= 8:
            b_tile = cand
        # else: keep the full batch; seq_tile drops to 1 row and the VMEM limit
        # is raised by the caller to cover the (rare) oversized block.
    seq_tile = max(1, min(S, target_bytes // max(1, b_tile * D * itemsize)))
    # 2-TC chips: make sure the (parallel) seq axis has >= num_cores steps.
    if num_cores > 1 and S > 1:
        seq_tile = min(seq_tile, pl.cdiv(S, num_cores))
    return seq_tile, b_tile


def positional_encoding_forward(x: jnp.ndarray, pe: jnp.ndarray, *,
                                in_place: bool = False) -> jnp.ndarray:
    """x: (S, B, D); pe: (max_len, 1, D). Returns x + pe[:S] (broadcast over batch)."""
    S, B, D = x.shape
    assert pe.ndim == 3 and pe.shape[1] == 1 and pe.shape[2] == D
    assert pe.shape[0] >= S, "sequence length exceeds positional table"

    # NOTE: PyTorch adds the f32 buffer (output dtype follows promotion); for
    # reduced-precision activations we instead match x.dtype to halve pe's HBM
    # traffic -- numerically fine for PE, exact for f32 activations.
    pe = pe.astype(x.dtype)

    itemsize = jnp.dtype(x.dtype).itemsize
    target_block, vmem_limit, num_cores = _hw_params()
    seq_tile, b_tile = _choose_tiles(S, B, D, itemsize, target_block, num_cores)

    # Double-buffered x-in + out (+ pe) must fit the scoped limit; bump it if the
    # fallback produced an oversized block instead of failing at compile time.
    block_bytes = seq_tile * b_tile * D * itemsize
    pe_bytes = seq_tile * D * itemsize
    vmem_limit = int(max(vmem_limit, 4 * block_bytes + 2 * pe_bytes + (1 << 20)))

    grid = (pl.cdiv(S, seq_tile), B // b_tile)

    extra = {}
    if in_place:
        # In-place add on x's HBM buffer (pair with donation at the jit boundary).
        extra["input_output_aliases"] = {0: 0}

    out = pl.pallas_call(
        _pe_add_kernel,
        out_shape=jax.ShapeDtypeStruct((S, B, D), x.dtype),
        grid_spec=pltpu.PrefetchScalarGridSpec(
            num_scalar_prefetch=0,
            grid=grid,
            in_specs=[
                pl.BlockSpec((seq_tile, b_tile, D), lambda i, j: (i, j, 0)),
                # pe rows follow the seq axis only; no wrapper-side pe[:S] slice.
                # (Kept default-double-buffered: its block changes with i, so the
                # second buffer is what hides its DMA; the VMEM cost is 1/B of x.)
                pl.BlockSpec((seq_tile, 1, D), lambda i, j: (i, 0, 0)),
            ],
            out_specs=pl.BlockSpec((seq_tile, b_tile, D), lambda i, j: (i, j, 0)),
        ),
        compiler_params=pltpu.CompilerParams(
            dimension_semantics=("parallel", "parallel"),
            vmem_limit_bytes=vmem_limit,
        ),
        cost_estimate=pl.CostEstimate(
            flops=S * B * D,
            bytes_accessed=2 * S * B * D * itemsize + S * D * itemsize,
            transcendentals=0,
        ),
        **extra,
    )(x, pe)
    return out


if __name__ == "__main__":
    # Small shapes consistent with the module's forward: x is (seq, batch, d_model).
    S, B, D = 8, 2, 32
    MAX_LEN = 64

    key = jax.random.PRNGKey(0)
    x = jax.random.normal(key, (S, B, D), dtype=jnp.float32)

    pe = make_pe_table(D, MAX_LEN)          # deterministic buffer, (MAX_LEN, 1, D)

    out = positional_encoding_forward(x, pe)
    out = jax.block_until_ready(out)

    # Reference check (pure JAX), same semantics as x + self.pe[:x.size(0)].
    ref = x + pe[:S]
    assert out.shape == (S, B, D)
    assert jnp.allclose(out, ref, atol=1e-6), "mismatch vs. reference"

    print("KERNEL_OK")
</pallas_src>

<mosaic_0001>
module attributes {stable_mosaic.version = 11 : i64} {
  func.func @_pe_add_kernel(%arg0: i32, %arg1: i32, %arg2: memref<8x2x32xf32, #tpu.memory_space<vmem>>, %arg3: memref<8x1x32xf32, #tpu.memory_space<vmem>>, %arg4: memref<8x2x32xf32, #tpu.memory_space<vmem>>) attributes {dimension_semantics = [#tpu.dimension_semantics<parallel>, #tpu.dimension_semantics<parallel>], iteration_bounds = array<i64: 1, 1>, scalar_prefetch = 0 : i64, scratch_operands = 0 : i64, tpu.core_type = #tpu.core_type<tc>, window_params = [{transform_indices = @transform_0, window_bounds = array<i64: 8, 2, 32>}, {transform_indices = @transform_1, window_bounds = array<i64: 8, 1, 32>}, {transform_indices = @transform_2, window_bounds = array<i64: 8, 2, 32>}]} {
    %c0 = arith.constant 0 : index
    %c0_0 = arith.constant 0 : index
    %c0_1 = arith.constant 0 : index
    %0 = vector.load %arg2[%c0, %c0_0, %c0_1] : memref<8x2x32xf32, #tpu.memory_space<vmem>>, vector<8x2x32xf32>
    %c0_2 = arith.constant 0 : index
    %c0_3 = arith.constant 0 : index
    %c0_4 = arith.constant 0 : index
    %1 = vector.load %arg3[%c0_2, %c0_3, %c0_4] : memref<8x1x32xf32, #tpu.memory_space<vmem>>, vector<8x1x32xf32>
    %2 = vector.broadcast %1 : vector<8x1x32xf32> to vector<8x2x32xf32>
    %3 = arith.addf %0, %2 : vector<8x2x32xf32>
    %c0_5 = arith.constant 0 : index
    %c0_6 = arith.constant 0 : index
    %c0_7 = arith.constant 0 : index
    %4 = vector.load %arg4[%c0_5, %c0_6, %c0_7] : memref<8x2x32xf32, #tpu.memory_space<vmem>>, vector<8x2x32xf32>
    tpu.vector_store %arg4[%c0_5, %c0_6, %c0_7], %3 {strides = array<i32>} : memref<8x2x32xf32, #tpu.memory_space<vmem>>, vector<8x2x32xf32>,
    return
  }
  func.func @transform_0(%arg0: i32, %arg1: i32) -> (i32, i32, i32) {
    %c0_i32 = arith.constant 0 : i32
    %c0_i32_0 = arith.constant 0 : i32
    return %arg0, %arg1, %c0_i32 : i32, i32, i32
  }
  func.func @transform_1(%arg0: i32, %arg1: i32) -> (i32, i32, i32) {
    %c0_i32 = arith.constant 0 : i32
    %c0_i32_0 = arith.constant 0 : i32
    %c0_i32_1 = arith.constant 0 : i32
    return %arg0, %c0_i32, %c0_i32_0 : i32, i32, i32
  }
  func.func @transform_2(%arg0: i32, %arg1: i32) -> (i32, i32, i32) {
    %c0_i32 = arith.constant 0 : i32
    %c0_i32_0 = arith.constant 0 : i32
    return %arg0, %arg1, %c0_i32 : i32, i32, i32
  }
}

</mosaic_0001>

<bundles_post_ra>
// kernel: tpu_custom_call.1
= control target key start
LH: loop header
LB: loop body
LE: loop exit
PB: predicated region body
PF: predicated region fallthrough
CT: control target
= control target key end

     0   :  { %vm84_vm0 = vcmask 254976   ;;  %s230_s0 = inlined_call_operand.vmem [shape: f32[8,2,32], index: 0, kind: input, shape index: {}]   ;;  %s231_s1 = inlined_call_operand.vmem [shape: f32[64,1,32], index: 1, kind: input, shape index: {}]   ;;  %s232_s2 = inlined_call_operand.hbm [shape: f32[8,2,32], index: 2, kind: output, shape index: {}]  }
   0x1   :  { %v12_v0 = vld [vmem:[%s230_s0] sm:$0x3]  ;;  %v13_v3 = vld [vmem:[%s230_s0 + $0x2] sm:$0x3]  ;;  %v14_v5 = vld [vmem:[%s230_s0 + $0x4] sm:$0x3] }
   0x2   :  { %v109_v1 = vld [vmem:[%s231_s1] ss:$0 sm:$0xff]  ;;  %v110_v4 = vld [vmem:[%s231_s1 + $0x1] ss:$0 sm:$0xff]  ;;  %v111_v7 = vld [vmem:[%s231_s1 + $0x2] ss:$0 sm:$0xff] }
   0x3   :  { %v76_v2 = vadd.f32 %v109_v1, %v12_v0  ;;  %v77_v6 = vadd.f32 %v110_v4, %v13_v3  ;;  %v15_v8 = vld [vmem:[%s230_s0 + $0x6] sm:$0x3]  ;;  %v112_v9 = vld [vmem:[%s231_s1 + $0x3] ss:$0 sm:$0xff]  ;;  %v78_v10 = vadd.f32 %v111_v7, %v14_v5  ;;  %v16_v12 = vld [vmem:[%s230_s0 + $0x8] sm:$0x3] }
   0x4   :  { %v79_v11 = vadd.f32 %v112_v9, %v15_v8  ;;  %v113_v13 = vld [vmem:[%s231_s1 + $0x4] ss:$0 sm:$0xff]  ;;  %v17_v14 = vld [vmem:[%s230_s0 + $0xa] sm:$0x3]  ;;  %v114_v16 = vld [vmem:[%s231_s1 + $0x5] ss:$0 sm:$0xff] }
   0x5   :  { %85 = vst.msk [vmem:[#allocation2] sm:$0x3] %vm84_vm0, %v76_v2  ;;  %86 = vst.msk [vmem:[#allocation2 + $0x2] sm:$0x3] %vm84_vm0, %v77_v6  ;;  %v80_v15 = vadd.f32 %v113_v13, %v16_v12  ;;  %v18_v17 = vld [vmem:[%s230_s0 + $0xc] sm:$0x3]  ;;  %v81_v19 = vadd.f32 %v114_v16, %v17_v14 }
   0x6   :  { %v115_v18 = vld [vmem:[%s231_s1 + $0x6] ss:$0 sm:$0xff]  ;;  %87 = vst.msk [vmem:[#allocation2 + $0x4] sm:$0x3] %vm84_vm0, %v78_v10  ;;  %88 = vst.msk [vmem:[#allocation2 + $0x6] sm:$0x3] %vm84_vm0, %v79_v11 }
   0x7   :  { %v82_v20 = vadd.f32 %v115_v18, %v18_v17  ;;  %v19_v21 = vld [vmem:[%s230_s0 + $0xe] sm:$0x3]  ;;  %v116_v22 = vld [vmem:[%s231_s1 + $0x7] ss:$0 sm:$0xff] }
   0x8   :  { %7 = vsyncpa [#allocation3], 0  ;;  %89 = vst.msk [vmem:[#allocation2 + $0x8] sm:$0x3] %vm84_vm0, %v80_v15  ;;  %v83_v23 = vadd.f32 %v116_v22, %v19_v21  ;;  %s144_s13 = smov [#allocation2]  }
   0x9   :  { %s98_s14 = sshll.u32 %s144_s13, 4  ;;  %90 = vst.msk [vmem:[#allocation2 + $0xa] sm:$0x3] %vm84_vm0, %v81_v19  ;;  %91 = vst.msk [vmem:[#allocation2 + $0xc] sm:$0x3] %vm84_vm0, %v82_v20  ;;  %s99_s14 = int_to_ptr.vmem [resolvable:$true] %s98_s14 }
   0xa   :  { %92 = vst.msk [vmem:[#allocation2 + $0xe] sm:$0x3] %vm84_vm0, %v83_v23  ;;  %s120_s15 = scalar_lea.vmem %s99_s14, 256  ;;  %p125_p1 = scmp.lt.s32.totalorder %s99_s14, %s99_s14 }
   0xb   :  { %p121_p0 = scmp.ne.s32.totalorder %s99_s14, %s120_s15  ;;  %p126_p2 = scmp.lt.s32.totalorder %s120_s15, %s120_s15 }
   0xd   :  { %p127_p3 = por %p126_p2, %p125_p1 }
   0xf   :  { %p128_p4 = pnand %p127_p3, %p121_p0 }
  0x11   :  { %131 = shalt.err (!%p128_p4)
}
  0x12   :  { %s132_s16 = scalar_lea.hbm %s232_s2, 256 }
  0x13   :  { %p133_p5 = scmp.ne.s32.totalorder %s232_s2, %s132_s16  ;;  %p136_p6 = scmp.lt.u32.totalorder %s132_s16, %s232_s2 }
  0x15   :  { %p138_p7 = pnand %p136_p6, %p133_p5 }
  0x17   :  { %141 = shalt.err (!%p138_p7)
}
  0x18   :  { %s145_s21 = smov 32   ;;  %s146_s22 = smov 2  }
  0x19   :  { %104 = dma.vmem_to_hbm [thread:$0]  %s99_s14, 256, %s232_s2, [#allocation3], %s145_s21, %s145_s21, %s146_s22  }
  0x1a   :  { %142 = dma.done.wait [#allocation3], 256  }
  0x1b   :  { %143 = vsyncadd [#allocation3], 4294967040 }
  0x1c   :  { %108 = vsyncpa [#allocation3], 1 }

</bundles_post_ra>
